<compile_context>
chip_gen: v7x
topology: tpu7x:2x2x1
jax: 0.10.0
libtpu: 0.0.40
codegen_flags: <defaults>
</compile_context>

<pallas_src>
import functools

import jax
import jax.numpy as jnp
from jax import lax
from jax.experimental import pallas as pl
from jax.experimental.pallas import tpu as pltpu


def _disc_kernel(u_ref, v_ref, w1a_ref, w1b_ref, aux_ref, o_ref):
    # Cast the streamed activations to bf16 in-kernel (VPU work that hides
    # under the DMA stream); HBM only ever sees a single read of u / v.
    u = u_ref[...].astype(jnp.bfloat16)
    v = v_ref[...].astype(jnp.bfloat16)

    # Layer 1: two K=E MXU passes with f32 accumulation.  (u and v are kept
    # separate so the wrapper never materializes cat([u, v]) in HBM.)
    h = jnp.dot(u, w1a_ref[...], preferred_element_type=jnp.float32)
    h = h + jnp.dot(v, w1b_ref[...], preferred_element_type=jnp.float32)

    # f32 epilogue (bias, LeakyReLU(0.2)) — keep f32: v5e VPU has no bf16.
    h = h + aux_ref[0:1, :]                       # b1
    h = jnp.where(h > 0, h, 0.2 * h)              # LeakyReLU(0.2)

    # Layer 2 (out_features == 1): contract the E axis of h against the w2
    # row directly, producing a lane-dense (1, TM) result — avoids the
    # per-row masked stores a (TM, 1) column output would need.
    y = lax.dot_general(
        aux_ref[1:2, :], h,
        dimension_numbers=(((1,), (1,)), ((), ())),
        preferred_element_type=jnp.float32)       # (1, TM)
    y = y + aux_ref[2:3, 0:1]                     # b2
    o_ref[...] = y.reshape(o_ref.shape).astype(o_ref.dtype)


def prepare_disc_params(w1, b1, w2, b2):
    """One-time parameter prep (hoisted out of the per-forward path).

    w1: [E, 2E], b1: [E], w2: [1, E], b2: [1]  (PyTorch nn.Linear layouts).
    """
    E = w1.shape[0]
    assert w1.shape == (E, 2 * E) and b1.shape == (E,)
    assert w2.shape == (1, E) and b2.shape == (1,)
    w1f = jnp.asarray(w1, jnp.float32)
    # Split W1.T into the half acting on u and the half acting on v, cast to
    # bf16 (native MXU input type).
    w1a = w1f[:, :E].T.astype(jnp.bfloat16)       # [E, E]   u-half of W1.T
    w1b = w1f[:, E:].T.astype(jnp.bfloat16)       # [E, E]   v-half of W1.T
    # Fuse the tiny f32 epilogue operands into a single (3, E) VMEM tile:
    # row 0 = b1, row 1 = w2 row, row 2 = b2 (broadcast).
    aux = jnp.stack([
        jnp.asarray(b1, jnp.float32),
        jnp.asarray(w2, jnp.float32).reshape(E),
        jnp.broadcast_to(jnp.asarray(b2, jnp.float32), (E,)),
    ])
    return w1a, w1b, aux


def _pick_tm(B, E, tm_max):
    """Rows per batch tile (static Python math at trace time)."""
    if B <= 8:
        return B                                   # one tile == full batch
    # VMEM budget for double-buffered f32 u+v tiles + double-buffered bf16
    # W1 halves; stay well inside v7x's 64 MiB physical VMEM.
    budget = 24 * 1024 * 1024
    wgt_bytes = 2 * (2 * E * E * 2)                # two (E,E) bf16 halves, x2 buffers
    per_row = 2 * (2 * E * 4)                      # u+v f32 bytes/row, x2 buffers
    cap = max(8, (budget - wgt_bytes) // per_row)
    tm = min(tm_max, cap, B)
    # Keep >= 2 grid steps so the "parallel" batch axis can split across
    # v7x's two TensorCores (no-op on single-TC v5e/v6e).
    half = -(-B // 2)
    half = -(-half // 8) * 8                       # round up to sublane multiple
    tm = min(tm, half)
    return max(8, (tm // 8) * 8)


def _vmem_limit_bytes(TM, E):
    act = 2 * (2 * TM * E * 4)                     # u+v tiles, double-buffered
    wgt = 2 * (2 * E * E * 2)                      # W1 halves, double-buffered
    aux = 2 * (8 * max(E, 128) * 4)                # padded (3,E) epilogue tile
    out = 2 * (8 * max(TM, 128) * 4)               # padded (1,1,TM) out tile
    need = act + wgt + aux + out
    # 2x headroom for Mosaic internal scratch / spilled intermediates.
    return int(min(64 * 1024 * 1024, max(16 * 1024 * 1024, 2 * need)))


@functools.partial(jax.jit, static_argnames=("tm_max",))
def flip_discriminator(u, v, params, *, tm_max=2048):
    """u, v: [B, E] float.  params: from prepare_disc_params.  Returns [B, 1] f32."""
    w1a, w1b, aux = params
    B, E = u.shape
    assert v.shape == (B, E)
    assert w1a.shape == (E, E) and w1b.shape == (E, E) and aux.shape == (3, E)

    # TODO(synk): for very large E (W1 halves >> VMEM budget) tile the output
    # E axis of W1 with a second grid dimension; not needed at typical E.
    TM = _pick_tm(B, E, tm_max)
    n_blk = pl.cdiv(B, TM)
    Bp = n_blk * TM
    if Bp != B:
        # Ragged last tile: pad u/v only (no [B, 2E] link is ever built).
        u = jnp.pad(u, ((0, Bp - B), (0, 0)))
        v = jnp.pad(v, ((0, Bp - B), (0, 0)))

    out = pl.pallas_call(
        _disc_kernel,
        # Lane-dense output slab: one (1, TM) row per batch tile.
        out_shape=jax.ShapeDtypeStruct((n_blk, 1, TM), jnp.float32),
        grid=(n_blk,),
        in_specs=[
            pl.BlockSpec((TM, E), lambda i: (i, 0)),     # u tile (streamed)
            pl.BlockSpec((TM, E), lambda i: (i, 0)),     # v tile (streamed)
            pl.BlockSpec((E, E), lambda i: (0, 0)),      # W1.T u-half (resident)
            pl.BlockSpec((E, E), lambda i: (0, 0)),      # W1.T v-half (resident)
            pl.BlockSpec((3, E), lambda i: (0, 0)),      # fused b1 / w2 / b2
        ],
        out_specs=pl.BlockSpec((1, 1, TM), lambda i: (i, 0, 0)),
        compiler_params=pltpu.CompilerParams(
            # Batch tiles are independent → shard across v7x's 2 TensorCores.
            dimension_semantics=("parallel",),
            # Budget derived from actual double-buffered tile sizes.
            vmem_limit_bytes=_vmem_limit_bytes(TM, E),
        ),
    )(u, v, w1a, w1b, aux)

    # (n_blk, 1, TM) in row-major order == batch order → layout-trivial
    # reshape.  NOTE: the [:B] slice also discards padded garbage rows when
    # B % TM != 0 — keep it.
    return out.reshape(Bp, 1)[:B]


def _xavier_uniform(key, shape):
    # Matches nn.init.xavier_uniform_ for a Linear weight of shape (out, in).
    fan_out, fan_in = shape
    limit = (6.0 / (fan_in + fan_out)) ** 0.5
    return jax.random.uniform(key, shape, jnp.float32, -limit, limit)


def reference_forward(u, v, w1, b1, w2, b2):
    link = jnp.concatenate([u, v], axis=1)
    h = link @ w1.T + b1
    h = jnp.where(h > 0, h, 0.2 * h)
    return h @ w2.T + b2


if __name__ == "__main__":
    B, E = 8, 32

    key = jax.random.PRNGKey(0)
    ku, kv, kw1, kw2 = jax.random.split(key, 4)

    u = jax.random.normal(ku, (B, E), jnp.float32)
    v = jax.random.normal(kv, (B, E), jnp.float32)

    # Deterministic parameter init mirroring the PyTorch module's __init__.
    w1 = _xavier_uniform(kw1, (E, 2 * E))   # Linear(2E -> E).weight
    b1 = jnp.zeros((E,), jnp.float32)       # bias filled with 0
    w2 = _xavier_uniform(kw2, (1, E))       # Linear(E -> 1).weight
    b2 = jnp.zeros((1,), jnp.float32)

    params = prepare_disc_params(w1, b1, w2, b2)   # one-time weight prep
    y = flip_discriminator(u, v, params)
    jax.block_until_ready(y)

    y_ref = reference_forward(u, v, w1, b1, w2, b2)
    assert y.shape == (B, 1)
    # bf16 matmul inputs with f32 accumulation → modest tolerance vs f32 ref.
    assert jnp.allclose(y, y_ref, atol=3e-2, rtol=3e-2), "mismatch vs reference"

    print("KERNEL_OK")
</pallas_src>

<mosaic_0001>
module attributes {stable_mosaic.version = 11 : i64} {
  func.func @_disc_kernel(%arg0: i32, %arg1: memref<8x32xf32, #tpu.memory_space<vmem>>, %arg2: memref<8x32xf32, #tpu.memory_space<vmem>>, %arg3: memref<32x32xbf16, #tpu.memory_space<vmem>>, %arg4: memref<32x32xbf16, #tpu.memory_space<vmem>>, %arg5: memref<3x32xf32, #tpu.memory_space<vmem>>, %arg6: memref<1x1x8xf32, #tpu.memory_space<vmem>>) attributes {dimension_semantics = [#tpu.dimension_semantics<parallel>], iteration_bounds = array<i64: 1>, scalar_prefetch = 0 : i64, scratch_operands = 0 : i64, tpu.core_type = #tpu.core_type<tc>, window_params = [{transform_indices = @transform_0, window_bounds = array<i64: 8, 32>}, {transform_indices = @transform_1, window_bounds = array<i64: 8, 32>}, {pipeline_mode = #tpu.pipeline_mode<synchronous>, transform_indices = @transform_2, window_bounds = array<i64: 32, 32>}, {pipeline_mode = #tpu.pipeline_mode<synchronous>, transform_indices = @transform_3, window_bounds = array<i64: 32, 32>}, {pipeline_mode = #tpu.pipeline_mode<synchronous>, transform_indices = @transform_4, window_bounds = array<i64: 3, 32>}, {transform_indices = @transform_5, window_bounds = array<i64: 1, 1, 8>}]} {
    %c0 = arith.constant 0 : index
    %c0_0 = arith.constant 0 : index
    %0 = vector.load %arg1[%c0, %c0_0] : memref<8x32xf32, #tpu.memory_space<vmem>>, vector<8x32xf32>
    %1 = arith.truncf %0 : vector<8x32xf32> to vector<8x32xbf16>
    %c0_1 = arith.constant 0 : index
    %c0_2 = arith.constant 0 : index
    %2 = vector.load %arg2[%c0_1, %c0_2] : memref<8x32xf32, #tpu.memory_space<vmem>>, vector<8x32xf32>
    %3 = arith.truncf %2 : vector<8x32xf32> to vector<8x32xbf16>
    %c0_3 = arith.constant 0 : index
    %c0_4 = arith.constant 0 : index
    %4 = vector.load %arg3[%c0_3, %c0_4] : memref<32x32xbf16, #tpu.memory_space<vmem>>, vector<32x32xbf16>
    %cst = arith.constant dense<0.000000e+00> : vector<8x32xf32>
    %5 = tpu.matmul %1, %4, %cst {dimension_numbers = #tpu.dot_dimension_numbers<[1], [0], [0], [1], [0, 0, 1, 1], [], []>} : vector<8x32xbf16>, vector<32x32xbf16>, vector<8x32xf32> -> vector<8x32xf32>
    %c0_5 = arith.constant 0 : index
    %c0_6 = arith.constant 0 : index
    %6 = vector.load %arg4[%c0_5, %c0_6] : memref<32x32xbf16, #tpu.memory_space<vmem>>, vector<32x32xbf16>
    %cst_7 = arith.constant dense<0.000000e+00> : vector<8x32xf32>
    %7 = tpu.matmul %3, %6, %cst_7 {dimension_numbers = #tpu.dot_dimension_numbers<[1], [0], [0], [1], [0, 0, 1, 1], [], []>} : vector<8x32xbf16>, vector<32x32xbf16>, vector<8x32xf32> -> vector<8x32xf32>
    %8 = arith.addf %5, %7 : vector<8x32xf32>
    %c0_8 = arith.constant 0 : index
    %c0_9 = arith.constant 0 : index
    %9 = vector.load %arg5[%c0_8, %c0_9] : memref<3x32xf32, #tpu.memory_space<vmem>>, vector<1x32xf32>
    %10 = vector.broadcast %9 : vector<1x32xf32> to vector<8x32xf32>
    %11 = arith.addf %8, %10 : vector<8x32xf32>
    %cst_10 = arith.constant 0.000000e+00 : f32
    %12 = vector.broadcast %cst_10 : f32 to vector<8x32xf32>
    %13 = arith.cmpf ogt, %11, %12 : vector<8x32xf32>
    %cst_11 = arith.constant 2.000000e-01 : f32
    %14 = vector.broadcast %cst_11 : f32 to vector<8x32xf32>
    %15 = arith.mulf %14, %11 : vector<8x32xf32>
    %16 = arith.select %13, %11, %15 : vector<8x32xi1>, vector<8x32xf32>
    %c1 = arith.constant 1 : index
    %c0_12 = arith.constant 0 : index
    %17 = vector.load %arg5[%c1, %c0_12] : memref<3x32xf32, #tpu.memory_space<vmem>>, vector<1x32xf32>
    %cst_13 = arith.constant dense<0.000000e+00> : vector<1x8xf32>
    %18 = tpu.matmul %17, %16, %cst_13 {dimension_numbers = #tpu.dot_dimension_numbers<[1], [1], [0], [0], [0, 0, 1, 0], [], []>} : vector<1x32xf32>, vector<8x32xf32>, vector<1x8xf32> -> vector<1x8xf32>
    %c2 = arith.constant 2 : index
    %c0_14 = arith.constant 0 : index
    %19 = vector.load %arg5[%c2, %c0_14] : memref<3x32xf32, #tpu.memory_space<vmem>>, vector<1x1xf32>
    %20 = vector.broadcast %19 : vector<1x1xf32> to vector<1x8xf32>
    %21 = arith.addf %18, %20 : vector<1x8xf32>
    %22 = vector.shape_cast %21 : vector<1x8xf32> to vector<1x1x8xf32>
    %c0_15 = arith.constant 0 : index
    %c0_16 = arith.constant 0 : index
    %c0_17 = arith.constant 0 : index
    %23 = vector.load %arg6[%c0_15, %c0_16, %c0_17] : memref<1x1x8xf32, #tpu.memory_space<vmem>>, vector<1x1x8xf32>
    tpu.vector_store %arg6[%c0_15, %c0_16, %c0_17], %22 {strides = array<i32>} : memref<1x1x8xf32, #tpu.memory_space<vmem>>, vector<1x1x8xf32>,
    return
  }
  func.func @transform_0(%arg0: i32) -> (i32, i32) {
    %c0_i32 = arith.constant 0 : i32
    %c0_i32_0 = arith.constant 0 : i32
    return %arg0, %c0_i32 : i32, i32
  }
  func.func @transform_1(%arg0: i32) -> (i32, i32) {
    %c0_i32 = arith.constant 0 : i32
    %c0_i32_0 = arith.constant 0 : i32
    return %arg0, %c0_i32 : i32, i32
  }
  func.func @transform_2(%arg0: i32) -> (i32, i32) {
    %c0_i32 = arith.constant 0 : i32
    %c0_i32_0 = arith.constant 0 : i32
    %c0_i32_1 = arith.constant 0 : i32
    return %c0_i32, %c0_i32_0 : i32, i32
  }
  func.func @transform_3(%arg0: i32) -> (i32, i32) {
    %c0_i32 = arith.constant 0 : i32
    %c0_i32_0 = arith.constant 0 : i32
    %c0_i32_1 = arith.constant 0 : i32
    return %c0_i32, %c0_i32_0 : i32, i32
  }
  func.func @transform_4(%arg0: i32) -> (i32, i32) {
    %c0_i32 = arith.constant 0 : i32
    %c0_i32_0 = arith.constant 0 : i32
    %c0_i32_1 = arith.constant 0 : i32
    return %c0_i32, %c0_i32_0 : i32, i32
  }
  func.func @transform_5(%arg0: i32) -> (i32, i32, i32) {
    %c0_i32 = arith.constant 0 : i32
    %c0_i32_0 = arith.constant 0 : i32
    %c0_i32_1 = arith.constant 0 : i32
    return %arg0, %c0_i32, %c0_i32_0 : i32, i32, i32
  }
}

</mosaic_0001>

<bundles_post_ra>
// kernel: flip_discriminator.1
= control target key start
LH: loop header
LB: loop body
LE: loop exit
PB: predicated region body
PF: predicated region fallthrough
CT: control target
= control target key end

     0   :  { %10 = vsyncpa [#allocation3], 0  ;;  %s594_s0 = inlined_call_operand.hbm [shape: f32[8,32], index: 0, kind: input, shape index: {}]   ;;  %s595_s1 = inlined_call_operand.hbm [shape: f32[8,32], index: 1, kind: input, shape index: {}]   ;;  %s596_s2 = inlined_call_operand.hbm [shape: bf16[32,32], index: 2, kind: input, shape index: {}]   ;;  %s597_s3 = inlined_call_operand.hbm [shape: bf16[32,32], index: 3, kind: input, shape index: {}]   ;;  %s598_s4 = inlined_call_operand.vmem [shape: f32[3,32], index: 4, kind: input, shape index: {}]   ;;  %s599_s5 = inlined_call_operand.hbm [shape: f32[1,1,8], index: 5, kind: output, shape index: {}]  }
   0x1   :  { %11 = vsyncpa [#allocation6], 0 }
   0x2   :  { %12 = vsyncpa [#allocation9], 0 }
   0x3   :  { %13 = vsyncpa [#allocation4], 0  ;;  %s478_s18 = smov [#allocation5]   ;;  %s479_s20 = smov [#allocation2]  }
   0x4   :  { %s30_s19 = sshll.u32 %s478_s18, 4  ;;  %s20_s21 = sshll.u32 %s479_s20, 4  ;;  %s31_s19 = int_to_ptr.vmem [resolvable:$true] %s30_s19  ;;  %s21_s21 = int_to_ptr.vmem [resolvable:$true] %s20_s21 }
   0x5   :  { %s360_s24 = scalar_lea.hbm %s595_s1, 128 }
   0x6   :  { %p361_p0 = scmp.ne.s32.totalorder %s595_s1, %s360_s24  ;;  %p364_p1 = scmp.lt.u32.totalorder %s360_s24, %s595_s1 }
   0x8   :  { %p366_p2 = pnand %p364_p1, %p361_p0 }
   0xa   :  { %369 = shalt.err (!%p366_p2)
}
   0xb   :  { %s370_s29 = scalar_lea.vmem %s31_s19, 128  ;;  %p375_p4 = scmp.lt.s32.totalorder %s31_s19, %s31_s19 }
   0xc   :  { %p371_p3 = scmp.ne.s32.totalorder %s31_s19, %s370_s29  ;;  %p376_p5 = scmp.lt.s32.totalorder %s370_s29, %s370_s29 }
   0xe   :  { %p377_p6 = por %p376_p5, %p375_p4 }
  0x10   :  { %p378_p7 = pnand %p377_p6, %p371_p3 }
  0x12   :  { %381 = shalt.err (!%p378_p7)
}
  0x13   :  { %33 = dma.hbm_to_vmem [thread:$0]  %s595_s1, 128, %s31_s19, [#allocation6]  }
  0x14   :  { %s382_s9 = scalar_lea.hbm %s594_s0, 128 }
  0x15   :  { %p383_p8 = scmp.ne.s32.totalorder %s594_s0, %s382_s9  ;;  %p386_p9 = scmp.lt.u32.totalorder %s382_s9, %s594_s0 }
  0x17   :  { %p388_p10 = pnand %p386_p9, %p383_p8 }
  0x19   :  { %391 = shalt.err (!%p388_p10)
}
  0x1a   :  { %s392_s14 = scalar_lea.vmem %s21_s21, 128  ;;  %p397_p12 = scmp.lt.s32.totalorder %s21_s21, %s21_s21 }
  0x1b   :  { %p393_p11 = scmp.ne.s32.totalorder %s21_s21, %s392_s14  ;;  %p398_p13 = scmp.lt.s32.totalorder %s392_s14, %s392_s14 }
  0x1d   :  { %p399_p0 = por %p398_p13, %p397_p12 }
  0x1f   :  { %p400_p1 = pnand %p399_p0, %p393_p11 }
  0x21   :  { %403 = shalt.err (!%p400_p1)
}
  0x22   :  { %23 = dma.hbm_to_vmem [thread:$0]  %s594_s0, 128, %s21_s21, [#allocation3]  }
  0x23   :  { %s480_s16 = smov [#allocation7]   ;;  %s404_s20 = scalar_lea.hbm %s596_s2, 256 }
  0x24   :  { %s39_s17 = sshll.u32 %s480_s16, 4  ;;  %p405_p2 = scmp.ne.s32.totalorder %s596_s2, %s404_s20  ;;  %s40_s17 = int_to_ptr.vmem [resolvable:$true] %s39_s17 }
  0x25   :  { %p408_p3 = scmp.lt.u32.totalorder %s404_s20, %s596_s2 }
  0x27   :  { %p410_p4 = pnand %p408_p3, %p405_p2 }
  0x29   :  { %413 = shalt.err (!%p410_p4)
}
  0x2a   :  { %s414_s26 = scalar_lea.vmem %s40_s17, 256  ;;  %p419_p6 = scmp.lt.s32.totalorder %s40_s17, %s40_s17 }
  0x2b   :  { %p415_p5 = scmp.ne.s32.totalorder %s40_s17, %s414_s26  ;;  %p420_p7 = scmp.lt.s32.totalorder %s414_s26, %s414_s26 }
  0x2d   :  { %p421_p8 = por %p420_p7, %p419_p6 }
  0x2f   :  { %p422_p9 = pnand %p421_p8, %p415_p5 }
  0x31   :  { %425 = shalt.err (!%p422_p9)
}
  0x32   :  { %s481_s0 = smov 64   ;;  %s482_s21 = smov 4  }
  0x33   :  { %45 = dma.hbm_to_vmem [thread:$0]  %s596_s2, 256, %s40_s17, [#allocation6], %s481_s0, %s481_s0, %s482_s21  }
  0x34   :  { %s483_s29 = smov [#allocation8]   ;;  %s426_s8 = scalar_lea.hbm %s597_s3, 256 }
  0x35   :  { %s51_s30 = sshll.u32 %s483_s29, 4  ;;  %p427_p10 = scmp.ne.s32.totalorder %s597_s3, %s426_s8  ;;  %s52_s30 = int_to_ptr.vmem [resolvable:$true] %s51_s30 }
  0x36   :  { %p430_p11 = scmp.lt.u32.totalorder %s426_s8, %s597_s3 }
  0x38   :  { %p432_p12 = pnand %p430_p11, %p427_p10 }
  0x3a   :  { %435 = shalt.err (!%p432_p12)
}
  0x3b   :  { %s436_s13 = scalar_lea.vmem %s52_s30, 256  ;;  %p441_p0 = scmp.lt.s32.totalorder %s52_s30, %s52_s30 }
  0x3c   :  { %p437_p13 = scmp.ne.s32.totalorder %s52_s30, %s436_s13  ;;  %p442_p1 = scmp.lt.s32.totalorder %s436_s13, %s436_s13 }
  0x3e   :  { %p443_p2 = por %p442_p1, %p441_p0 }
  0x40   :  { %p444_p3 = pnand %p443_p2, %p437_p13 }
  0x42   :  { %447 = shalt.err (!%p444_p3)
}
  0x43   :  { %57 = dma.hbm_to_vmem [thread:$0]  %s597_s3, 256, %s52_s30, [#allocation9], %s481_s0, %s481_s0, %s482_s21  }
  0x44   :  { %470 = dma.done.wait [#allocation3], 128  }
  0x45   :  { %471 = vsyncadd [#allocation3], 4294967168 }
  0x46   :  { %472 = dma.done.wait [#allocation6], 384  }
  0x47   :  { %473 = vsyncadd [#allocation6], 4294966912 }
  0x48   :  { %474 = dma.done.wait [#allocation9], 256  }
  0x49   :  { %475 = vsyncadd [#allocation9], 4294967040  ;;  %v484_v0 = vmov 0.0   ;;  %vm485_vm0 = vmmov 0   ;;  %v356_v1 = vld [vmem:[#allocation8] sm:$0xff]   ;;  %v357_v2 = vld [vmem:[#allocation7] sm:$0xff]  }
  0x4a   :  { %324 = vmatprep.subr.bf16.mxu0 %v484_v0  ;;  %332 = vmatprep.subr.bf16.mxu1 %v484_v0  ;;  %v358_v3 = vld [vmem:[#allocation8 + $0x8] sm:$0xff]   ;;  %v359_v4 = vld [vmem:[#allocation7 + $0x8] sm:$0xff]   ;;  %v73_v6 = vld [vmem:[#allocation2] sm:$0xff]  ;;  %vm97_vm1 = vcmask 261120   ;;  %v486_v10 = vmov 0   ;;  %s487_s19 = smov [#allocation10]  }
  0x4b   :  { %328 = vmatprep.mubr.msk.bf16.mxu0 %vm485_vm0, %v484_v0  ;;  %336 = vmatprep.mubr.msk.bf16.mxu1 %vm485_vm0, %v484_v0  ;;  %v75_v5 = vld [vmem:[#allocation5] sm:$0xff]  ;;  %v74_v8 = vpack.c.bf16 %v73_v6, %v73_v6  ;;  %v206_v9 = vld [vmem:[%s598_s4 + $0x2] sm:$0x1]  ;;  %v313_v13 = vld [vmem:[%s598_s4] ss:$0 sm:$0xff]  ;;  %s296_s20 = sshll.u32 %s487_s19, 4  ;;  %s297_s20 = int_to_ptr.vmem [resolvable:$true] %s296_s20 }
  0x4c   :  { %325 = vmatpush3.bf16.msra.mxu0 %v356_v1  ;;  %333 = vmatpush3.bf16.msra.mxu1 %v357_v2  ;;  %v76_v7 = vpack.c.bf16 %v75_v5, %v75_v5  ;;  %v205_v24 = vld [vmem:[%s598_s4 + $0x1] sm:$0x1]  ;;  %vm288_vm3 = vcmask 57344   ;;  %s448_s22 = scalar_lea.vmem %s297_s20, 16  ;;  %s452_s23 = scalar_lea.vmem %s297_s20, 32 }
  0x4d   :  { %326 = vmatprep.subr.bf16.mxu0 %v484_v0  ;;  %334 = vmatprep.subr.bf16.mxu1 %v484_v0  ;;  %p449_p4 = scmp.ne.s32.totalorder %s297_s20, %s448_s22  ;;  %p453_p5 = scmp.lt.s32.totalorder %s297_s20, %s297_s20 }
  0x4e   :  { %355 = vset.pattern.permute.xlu0 %v486_v10  ;;  %p454_p6 = scmp.lt.s32.totalorder %s452_s23, %s448_s22 }
  0x4f   :  { %209 = vperm.xlu0 %355, %v206_v9  }
  0x50   :  { %327 = vmatpush3.bf16.msra.mxu0 %v358_v3  ;;  %335 = vmatpush3.bf16.msra.mxu1 %v359_v4  ;;  %p455_p7 = por %p454_p6, %p453_p5 }
  0x51   :  { %340 = vmatprep.subr.mxu0 %v484_v0 }
  0x52   :  { %p456_p8 = pnand %p455_p7, %p449_p4 }
  0x53   :  { %329 = vmatmul.mubr.msk.bf16.vlgmr.msra.gmra.mrb[0].mxu0 %vm97_vm1, %v76_v7  ;;  %337 = vmatmul.mubr.msk.bf16.vlgmr.msra.gmra.mrb[0].mxu1 %vm97_vm1, %v74_v8 }
  0x54   :  { %342 = vmatprep.mubr.msk.f32.mxu0 %vm485_vm0, %v484_v0 }
  0xce   :  { %v210_v25 = vpop.permute.xlu0 %209 }
 0x126   :  { %v135_v11 = vpop.f32.mrb[0].mxu0  ;;  %v190_v12 = vpop.f32.mrb[0].mxu1 }
 0x127   :  { %v330_v14 = vpop.f32.mrb[1].mxu0  ;;  %v191_v15 = vadd.f32 %v190_v12, %v135_v11  ;;  %v338_v16 = vpop.f32.mrb[1].mxu1 }
 0x128   :  { %v138_v17 = vpop.f32.mrb[2].mxu0  ;;  %v193_v18 = vpop.f32.mrb[2].mxu1 }
 0x129   :  { %v331_v19 = vpop.f32.mrb[3].mxu0  ;;  %v201_v20 = vadd.f32 %v313_v13, %v191_v15  ;;  %v339_v21 = vpop.f32.mrb[3].mxu1 }
 0x12b   :  { %vm202_vm2 = vcmp.gt.f32.partialorder %v201_v20, 0.0  ;;  %v203_v22 = vmul.f32 0.2, %v201_v20 }
 0x12d   :  { %v204_v23 = vsel %vm202_vm2, %v201_v20, %v203_v22 }
 0x12e   :  { %341 = vmatpush3.xpose.msk.msra.mxu0 %vm97_vm1, %v204_v23 }
 0x131   :  { %343 = vmatmul.mubr.msk.f32.vlgmr.msra.gmra.mrb[4].mxu0 %vm97_vm1, %v205_v24 }
 0x204   :  { %v284_v26 = vpop.f32.mrb[4].mxu0 }
 0x205   :  { %v285_v27 = vadd.f32 %v284_v26, %v210_v25  ;;  %v344_v28 = vpop.f32.mrb[5].mxu0 }
 0x207   :  { %289 = vst.msk [vmem:[#allocation10] sm:$0x1] %vm288_vm3, %v285_v27 }
 0x208   :  { %459 = shalt.err (!%p456_p8)
}
 0x209   :  { %s460_s25 = scalar_lea.hbm %s599_s5, 16 }
 0x20a   :  { %p461_p9 = scmp.ne.s32.totalorder %s599_s5, %s460_s25  ;;  %p464_p10 = scmp.lt.u32.totalorder %s460_s25, %s599_s5 }
 0x20c   :  { %p466_p11 = pnand %p464_p10, %p461_p9 }
 0x20e   :  { %469 = shalt.err (!%p466_p11)
}
 0x20f   :  { %299 = dma.vmem_to_hbm [thread:$0]  %s297_s20, 16, %s599_s5, [#allocation4]  }
 0x210   :  { %476 = dma.done.wait [#allocation4], 16  }
 0x211   :  { %477 = vsyncadd [#allocation4], 4294967280 }
 0x212   :  { %303 = vsyncpa [#allocation3], 1 }
 0x213   :  { %304 = vsyncpa [#allocation6], 1 }
 0x214   :  { %305 = vsyncpa [#allocation9], 1 }
 0x215   :  { %306 = vsyncpa [#allocation4], 1 }

</bundles_post_ra>
